<compile_context>
chip_gen: v5e
topology: v5e:2x2
jax: 0.10.0
libtpu: 0.0.40
codegen_flags: <defaults>
</compile_context>

<pallas_src>
import jax
import jax.numpy as jnp
from jax.experimental import pallas as pl
from jax.experimental.pallas import tpu as pltpu


def _round_up(x, m):
    return ((x + m - 1) // m) * m


def _cdiv(a, b):
    return (a + b - 1) // b


def _vmem_budget_bytes():
    """Generation-aware scoped-VMEM budget (v5e/v6e: 128 MiB phys, v7x: 64 MiB)."""
    try:
        cap = pltpu.get_tpu_info().vmem_capacity_bytes
    except Exception:
        cap = None
    if cap is None:
        cap = 64 * 1024 * 1024  # conservative fallback: assume v7x-sized VMEM
    if cap >= 128 * 1024 * 1024:
        return 100 * 1024 * 1024  # v5e / v6e
    return 48 * 1024 * 1024       # v7x: leave headroom in the 64 MiB per-TC VMEM


def linear_kernel(x_ref, w_ref, b_ref, o_ref):
    """One (tm, tn) output tile; K (reduction) is the last ('arbitrary') grid axis.

    The f32 output tile is resident in VMEM across K and used directly as the
    accumulator: first K step writes, later steps accumulate, last step adds bias.
    """
    k = pl.program_id(2)
    partial = jnp.dot(x_ref[...], w_ref[...], preferred_element_type=jnp.float32)

    @pl.when(k == 0)
    def _first():
        o_ref[...] = partial

    @pl.when(k != 0)
    def _accumulate():
        o_ref[...] += partial

    @pl.when(k == pl.num_programs(2) - 1)
    def _add_bias():
        o_ref[...] += b_ref[...]


class PallasLinear:
    """Pallas-TPU equivalent of torch.nn.Linear: y = x @ weight.T + bias."""

    def __init__(self, weight, bias, *, tm_max=512, tn_max=512, tk_max=2048):
        weight = jnp.asarray(weight, jnp.float32)  # (N, K) PyTorch layout
        bias = jnp.asarray(bias, jnp.float32)      # (N,)
        N, K = weight.shape
        assert bias.shape == (N,)

        budget = _vmem_budget_bytes()

        # Balanced, aligned tiling of the static (N, K) dims.
        gn = _cdiv(N, tn_max)
        tn = _round_up(_cdiv(N, gn), 128)
        gk = _cdiv(K, tk_max)
        tk = _round_up(_cdiv(K, gk), 128)

        # Keep the double-buffered working set (x, w blocks x2; out x2; bias x2)
        # inside the per-generation VMEM budget for the largest tm.
        def fits(tm_, tn_, tk_):
            return 4 * (2 * tm_ * tk_ + 2 * tk_ * tn_ + 2 * tm_ * tn_ + 2 * tn_) <= budget

        while not fits(tm_max, tn, tk) and tk > 128:
            tk = max(128, _round_up(tk // 2, 128))
        while not fits(tm_max, tn, tk) and tn > 128:
            tn = max(128, _round_up(tn // 2, 128))

        gn = _cdiv(N, tn)
        gk = _cdiv(K, tk)
        Np = tn * gn
        Kp = tk * gk

        # One-time weight transpose (N, K) -> (K, N) + pad; zero K-padding is
        # exact for the contraction, padded N columns are sliced off on output.
        w_kn = weight.T
        if (Kp, Np) != (K, N):
            w_kn = jnp.pad(w_kn, ((0, Kp - K), (0, Np - N)))
        b_p = bias if Np == N else jnp.pad(bias, (0, Np - N))

        self.N, self.K = N, K
        self.tn, self.tk, self.Np, self.Kp = tn, tk, Np, Kp
        self.tm_max = tm_max
        self.vmem_limit = budget
        self.w_kn = w_kn               # (Kp, Np) f32, K-contracting layout
        self.b2d = b_p.reshape(1, Np)  # (1, Np)  f32

    def __call__(self, x, *, force_pallas=False):
        x = jnp.asarray(x, jnp.float32)
        M, K = x.shape
        assert K == self.K
        N, tn, tk, Np, Kp = self.N, self.tn, self.tk, self.Np, self.Kp

        # Sub-tile fast path: for a (1,1,1) grid, pad/slice copies and launch
        # overhead dominate — a plain XLA dot is strictly faster.
        if not force_pallas and M <= 8 and N <= 128 and K <= 512:
            return jnp.dot(x, self.w_kn[:K, :N]) + self.b2d[0, :N]

        # Balanced, sublane-aligned M tiling (avoids padding M=300 up to 512).
        gm = _cdiv(M, self.tm_max)
        gn = Np // tn
        # Guarantee >= 2 blocks along a parallel axis so both v7x TensorCores
        # get work even when M and N each fit in a single tile.
        if gm == 1 and gn == 1 and M >= 16:
            gm = 2
        tm = _round_up(_cdiv(M, gm), 8)
        Mp = tm * gm

        # Only x may ever need a per-call pad (ragged M and/or unaligned K).
        x_p = x if (Mp == M and Kp == K) else jnp.pad(x, ((0, Mp - M), (0, Kp - K)))

        gk = Kp // tk
        grid = (gm, gn, gk)

        cost = pl.CostEstimate(
            flops=2 * Mp * Np * Kp,
            transcendentals=0,
            # account for operand re-reads across the M/N grid
            bytes_accessed=4 * (Mp * Kp * gn + Kp * Np * gm + Mp * Np + Np),
        )

        out_padded = pl.pallas_call(
            linear_kernel,
            out_shape=jax.ShapeDtypeStruct((Mp, Np), jnp.float32),
            grid_spec=pltpu.PrefetchScalarGridSpec(
                num_scalar_prefetch=0,
                grid=grid,
                in_specs=[
                    pl.BlockSpec((tm, tk), lambda i, j, k: (i, k)),  # x tile
                    pl.BlockSpec((tk, tn), lambda i, j, k: (k, j)),  # weight (K, N) tile
                    pl.BlockSpec((1, tn), lambda i, j, k: (0, j)),   # bias tile
                ],
                out_specs=pl.BlockSpec((tm, tn), lambda i, j, k: (i, j)),
            ),
            compiler_params=pltpu.CompilerParams(
                dimension_semantics=("parallel", "parallel", "arbitrary"),
                vmem_limit_bytes=self.vmem_limit,
            ),
            cost_estimate=cost,
        )(x_p, self.w_kn, self.b2d)

        if (Mp, Np) == (M, N):
            return out_padded
        return out_padded[:M, :N]


if __name__ == "__main__":
    key = jax.random.PRNGKey(0)

    # --- Case 1: small shapes implied by LinearRegression -------------------
    batch, input_dim, output_dim = 8, 32, 16
    k1, k2, k3, key = jax.random.split(key, 4)
    x = jax.random.normal(k1, (batch, input_dim), dtype=jnp.float32)
    bound = 1.0 / (input_dim ** 0.5)
    weight = jax.random.uniform(
        k2, (output_dim, input_dim), minval=-bound, maxval=bound, dtype=jnp.float32
    )
    bias = jax.random.uniform(
        k3, (output_dim,), minval=-bound, maxval=bound, dtype=jnp.float32
    )

    lin = PallasLinear(weight, bias)
    out_fast = jax.block_until_ready(lin(x))                       # XLA fast path
    out_pallas = jax.block_until_ready(lin(x, force_pallas=True))  # Pallas path
    ref = x @ weight.T + bias
    assert out_pallas.shape == (batch, output_dim)
    assert jnp.allclose(out_fast, ref, atol=1e-5, rtol=1e-5)
    assert jnp.allclose(out_pallas, ref, atol=1e-5, rtol=1e-5)

    # --- Case 2: larger, non-divisible shapes (tiling / padding / megacore) -
    M2, K2, N2 = 300, 1024, 200
    k4, k5, k6 = jax.random.split(key, 3)
    x2 = jax.random.normal(k4, (M2, K2), dtype=jnp.float32)
    bound2 = 1.0 / (K2 ** 0.5)
    w2 = jax.random.uniform(k5, (N2, K2), minval=-bound2, maxval=bound2, dtype=jnp.float32)
    b2 = jax.random.uniform(k6, (N2,), minval=-bound2, maxval=bound2, dtype=jnp.float32)

    lin2 = PallasLinear(w2, b2)
    out2 = jax.block_until_ready(lin2(x2))
    ref2 = x2 @ w2.T + b2
    assert out2.shape == (M2, N2)
    assert jnp.allclose(out2, ref2, atol=1e-4, rtol=1e-4)

    print("KERNEL_OK")
</pallas_src>

<mosaic_0001>
module attributes {stable_mosaic.version = 11 : i64} {
  func.func @linear_kernel(%arg0: i32, %arg1: i32, %arg2: i32, %arg3: memref<8x128xf32, #tpu.memory_space<vmem>>, %arg4: memref<128x128xf32, #tpu.memory_space<vmem>>, %arg5: memref<1x128xf32, #tpu.memory_space<vmem>>, %arg6: memref<8x128xf32, #tpu.memory_space<vmem>>) attributes {dimension_semantics = [#tpu.dimension_semantics<parallel>, #tpu.dimension_semantics<parallel>, #tpu.dimension_semantics<arbitrary>], iteration_bounds = array<i64: 1, 1, 1>, scalar_prefetch = 0 : i64, scratch_operands = 0 : i64, tpu.core_type = #tpu.core_type<tc>, window_params = [{transform_indices = @transform_0, window_bounds = array<i64: 8, 128>}, {transform_indices = @transform_1, window_bounds = array<i64: 128, 128>}, {transform_indices = @transform_2, window_bounds = array<i64: 1, 128>}, {transform_indices = @transform_3, window_bounds = array<i64: 8, 128>}]} {
    %c0 = arith.constant 0 : index
    %c0_0 = arith.constant 0 : index
    %0 = vector.load %arg3[%c0, %c0_0] : memref<8x128xf32, #tpu.memory_space<vmem>>, vector<8x128xf32>
    %c0_1 = arith.constant 0 : index
    %c0_2 = arith.constant 0 : index
    %1 = vector.load %arg4[%c0_1, %c0_2] : memref<128x128xf32, #tpu.memory_space<vmem>>, vector<128x128xf32>
    %cst = arith.constant dense<0.000000e+00> : vector<8x128xf32>
    %2 = tpu.matmul %0, %1, %cst {dimension_numbers = #tpu.dot_dimension_numbers<[1], [0], [0], [1], [0, 0, 1, 1], [], []>} : vector<8x128xf32>, vector<128x128xf32>, vector<8x128xf32> -> vector<8x128xf32>
    %c0_i32 = arith.constant 0 : i32
    %3 = arith.cmpi eq, %arg2, %c0_i32 : i32
    %4 = arith.extui %3 : i1 to i32
    %c0_i32_3 = arith.constant 0 : i32
    %5 = arith.cmpi ne, %4, %c0_i32_3 : i32
    scf.if %5 {
      %c0_8 = arith.constant 0 : index
      %c0_9 = arith.constant 0 : index
      %12 = vector.load %arg6[%c0_8, %c0_9] : memref<8x128xf32, #tpu.memory_space<vmem>>, vector<8x128xf32>
      tpu.vector_store %arg6[%c0_8, %c0_9], %2 {strides = array<i32>} : memref<8x128xf32, #tpu.memory_space<vmem>>, vector<8x128xf32>,
    } else {
    }
    %c0_i32_4 = arith.constant 0 : i32
    %6 = arith.cmpi ne, %arg2, %c0_i32_4 : i32
    %7 = arith.extui %6 : i1 to i32
    %c0_i32_5 = arith.constant 0 : i32
    %8 = arith.cmpi ne, %7, %c0_i32_5 : i32
    scf.if %8 {
      %c0_8 = arith.constant 0 : index
      %c0_9 = arith.constant 0 : index
      %12 = vector.load %arg6[%c0_8, %c0_9] : memref<8x128xf32, #tpu.memory_space<vmem>>, vector<8x128xf32>
      %13 = arith.addf %12, %2 : vector<8x128xf32>
      %c0_10 = arith.constant 0 : index
      %c0_11 = arith.constant 0 : index
      %14 = vector.load %arg6[%c0_10, %c0_11] : memref<8x128xf32, #tpu.memory_space<vmem>>, vector<8x128xf32>
      tpu.vector_store %arg6[%c0_10, %c0_11], %13 {strides = array<i32>} : memref<8x128xf32, #tpu.memory_space<vmem>>, vector<8x128xf32>,
    } else {
    }
    %c0_i32_6 = arith.constant 0 : i32
    %9 = arith.cmpi eq, %arg2, %c0_i32_6 : i32
    %10 = arith.extui %9 : i1 to i32
    %c0_i32_7 = arith.constant 0 : i32
    %11 = arith.cmpi ne, %10, %c0_i32_7 : i32
    scf.if %11 {
      %c0_8 = arith.constant 0 : index
      %c0_9 = arith.constant 0 : index
      %12 = vector.load %arg6[%c0_8, %c0_9] : memref<8x128xf32, #tpu.memory_space<vmem>>, vector<8x128xf32>
      %c0_10 = arith.constant 0 : index
      %c0_11 = arith.constant 0 : index
      %13 = vector.load %arg5[%c0_10, %c0_11] : memref<1x128xf32, #tpu.memory_space<vmem>>, vector<1x128xf32>
      %14 = vector.broadcast %13 : vector<1x128xf32> to vector<8x128xf32>
      %15 = arith.addf %12, %14 : vector<8x128xf32>
      %c0_12 = arith.constant 0 : index
      %c0_13 = arith.constant 0 : index
      %16 = vector.load %arg6[%c0_12, %c0_13] : memref<8x128xf32, #tpu.memory_space<vmem>>, vector<8x128xf32>
      tpu.vector_store %arg6[%c0_12, %c0_13], %15 {strides = array<i32>} : memref<8x128xf32, #tpu.memory_space<vmem>>, vector<8x128xf32>,
    } else {
    }
    return
  }
  func.func @transform_0(%arg0: i32, %arg1: i32, %arg2: i32) -> (i32, i32) {
    %c0_i32 = arith.constant 0 : i32
    return %arg0, %arg2 : i32, i32
  }
  func.func @transform_1(%arg0: i32, %arg1: i32, %arg2: i32) -> (i32, i32) {
    %c0_i32 = arith.constant 0 : i32
    return %arg2, %arg1 : i32, i32
  }
  func.func @transform_2(%arg0: i32, %arg1: i32, %arg2: i32) -> (i32, i32) {
    %c0_i32 = arith.constant 0 : i32
    %c0_i32_0 = arith.constant 0 : i32
    return %c0_i32, %arg1 : i32, i32
  }
  func.func @transform_3(%arg0: i32, %arg1: i32, %arg2: i32) -> (i32, i32) {
    %c0_i32 = arith.constant 0 : i32
    return %arg0, %arg1 : i32, i32
  }
}

</mosaic_0001>

<bundles_post_ra>
// kernel: tpu_custom_call.1
= control target key start
LH: loop header
LB: loop body
LE: loop exit
PB: predicated region body
PF: predicated region fallthrough
CT: control target
= control target key end

     0   :  { %8 = vsyncpa [#allocation3], 0  ;;  %s243_s0 = inlined_call_operand.hbm [shape: f32[8,128], index: 0, kind: input, shape index: {}]   ;;  %s244_s1 = inlined_call_operand.hbm [shape: f32[128,128], index: 1, kind: input, shape index: {}]   ;;  %s245_s2 = inlined_call_operand.vmem [shape: f32[1,128], index: 2, kind: input, shape index: {}]   ;;  %s246_s3 = inlined_call_operand.hbm [shape: f32[8,128], index: 3, kind: output, shape index: {}]  }
   0x1   :  { %9 = vsyncpa [#allocation6], 0 }
   0x2   :  { %10 = vsyncpa [#allocation4], 0  ;;  %s16_s14 = sshll.u32 %s243_s0, 4  ;;  %s206_s15 = smov [#allocation2]   ;;  %s17_s14 = int_to_ptr.hbm [resolvable:$true] %s16_s14 }
   0x3   :  { %s18_s16 = sshll.u32 %s206_s15, 4  ;;  %s26_s19 = sshll.u32 %s244_s1, 4  ;;  %s19_s16 = int_to_ptr.vmem [resolvable:$true] %s18_s16  ;;  %s27_s19 = int_to_ptr.hbm [resolvable:$true] %s26_s19 }
   0x4   :  { %21 = dma.hbm_to_vmem [thread:$0]  %s17_s14, 128, %s19_s16, [#allocation3]  }
   0x5   :  { %s207_s20 = smov [#allocation5]   ;;  %s208_s22 = smov 128  }
   0x6   :  { %s28_s21 = sshll.u32 %s207_s20, 4  ;;  %s209_s23 = smov 8   ;;  %s29_s21 = int_to_ptr.vmem [resolvable:$true] %s28_s21 }
   0x7   :  { %34 = dma.hbm_to_vmem [thread:$0]  %s27_s19, 2048, %s29_s21, [#allocation6], %s208_s22, %s208_s22, %s209_s23  }
   0x8   :  { %200 = dma.done.wait [#allocation3], 128  }
   0x9   :  { %201 = vsyncadd [#allocation3], 4294967168 }
   0xa   :  { %202 = dma.done.wait [#allocation6], 2048  }
   0xb   :  { %203 = vsyncadd [#allocation6], 4294965248  ;;  %v61_v0 = vld [vmem:[#allocation5 + $0x78] sm:$0xff]  ;;  %v60_v1 = vld [vmem:[#allocation5 + $0x70] sm:$0xff]  ;;  %s210_s24 = smov [#allocation7]   ;;  %s111_s28 = sshll.u32 %s246_s3, 4  ;;  %s112_s28 = int_to_ptr.hbm [resolvable:$true] %s111_s28 }
   0xc   :  { %62 = vmatpush.msra.mxu0 %v61_v0  ;;  %v59_v2 = vld [vmem:[#allocation5 + $0x68] sm:$0xff]  ;;  %v58_v3 = vld [vmem:[#allocation5 + $0x60] sm:$0xff]  ;;  %v57_v4 = vld [vmem:[#allocation5 + $0x58] sm:$0xff]  ;;  %s109_s25 = sshll.u32 %s210_s24, 4  ;;  %s110_s25 = int_to_ptr.vmem [resolvable:$true] %s109_s25 }
   0xd   :  { %v56_v5 = vld [vmem:[#allocation5 + $0x50] sm:$0xff]  ;;  %v55_v6 = vld [vmem:[#allocation5 + $0x48] sm:$0xff]  ;;  %v54_v7 = vld [vmem:[#allocation5 + $0x40] sm:$0xff] }
   0xe   :  { %63 = vmatpush.msra.mxu0 %v60_v1  ;;  %v53_v8 = vld [vmem:[#allocation5 + $0x38] sm:$0xff]  ;;  %v52_v9 = vld [vmem:[#allocation5 + $0x30] sm:$0xff]  ;;  %v51_v10 = vld [vmem:[#allocation5 + $0x28] sm:$0xff] }
   0xf   :  { %v50_v11 = vld [vmem:[#allocation5 + $0x20] sm:$0xff]  ;;  %v49_v12 = vld [vmem:[#allocation5 + $0x18] sm:$0xff]  ;;  %v48_v13 = vld [vmem:[#allocation5 + $0x10] sm:$0xff] }
  0x10   :  { %64 = vmatpush.msra.mxu0 %v59_v2  ;;  %v47_v14 = vld [vmem:[#allocation5 + $0x8] sm:$0xff]  ;;  %v46_v15 = vld [vmem:[#allocation5] sm:$0xff]  ;;  %v45_v16 = vld [vmem:[#allocation2] sm:$0xff] }
  0x11   :  { %v127_v17 = vld [vmem:[%s245_s2] ss:$0 sm:$0xff] }
  0x12   :  { %65 = vmatpush.msra.mxu0 %v58_v3 }
  0x14   :  { %66 = vmatpush.msra.mxu0 %v57_v4 }
  0x16   :  { %67 = vmatpush.msra.mxu0 %v56_v5 }
  0x18   :  { %68 = vmatpush.msra.mxu0 %v55_v6 }
  0x1a   :  { %69 = vmatpush.msra.mxu0 %v54_v7 }
  0x1c   :  { %70 = vmatpush.msra.mxu0 %v53_v8 }
  0x1e   :  { %71 = vmatpush.msra.mxu0 %v52_v9 }
  0x20   :  { %72 = vmatpush.msra.mxu0 %v51_v10 }
  0x22   :  { %73 = vmatpush.msra.mxu0 %v50_v11 }
  0x24   :  { %74 = vmatpush.msra.mxu0 %v49_v12 }
  0x26   :  { %75 = vmatpush.msra.mxu0 %v48_v13 }
  0x28   :  { %76 = vmatpush.msra.mxu0 %v47_v14 }
  0x2a   :  { %77 = vmatpush.msra.mxu0 %v46_v15 }
  0x2b   :  { %78 = vmatmul.f32.vlgmr.msra.gmra.mxu0 %v45_v16 }
  0xa8   :  { %v79_v18 = vpop.f32.mrf.mxu0 }
  0xa9   :  { %v102_v19 = vadd.f32 %v127_v17, %v79_v18 }
  0xab   :  { %103 = vst [vmem:[#allocation7] sm:$0xff] %v102_v19 }
  0xac   :  { %114 = dma.vmem_to_hbm [thread:$0]  %s110_s25, 128, %s112_s28, [#allocation4]  }
  0xad   :  { %204 = dma.done.wait [#allocation4], 128  }
  0xae   :  { %205 = vsyncadd [#allocation4], 4294967168 }
  0xaf   :  { %119 = vsyncpa [#allocation3], 1 }
  0xb0   :  { %120 = vsyncpa [#allocation6], 1 }
  0xb1   :  { %121 = vsyncpa [#allocation4], 1 }

</bundles_post_ra>
